<compile_context>
chip_gen: v7x
topology: tpu7x:2x2x1
jax: 0.10.0
libtpu: 0.0.40
codegen_flags: <defaults>
</compile_context>

<pallas_src>
import functools

import jax
import jax.numpy as jnp
from jax.experimental import pallas as pl
from jax.experimental.pallas import tpu as pltpu


def _ns_iou_kernel(pred_ref, tgt_ref, w_ref, rho_ref, out_ref, *, n_boxes):
    """One lane tile: aligned IoU -> -log -> node-selective decay -> scalar."""
    eps = 1e-6
    num_trees = rho_ref.shape[0]
    tn = pred_ref.shape[-1]

    # pred_ref: (4, G, TN); leading-axis indexing keeps (8,128) tiles intact.
    px1 = pred_ref[0]                        # (G, TN)
    py1 = pred_ref[1]
    px2 = pred_ref[2]
    py2 = pred_ref[3]
    # tgt_ref: (4, 1, TN)
    tx1 = tgt_ref[0]                         # (1, TN) -> broadcast over G rows
    ty1 = tgt_ref[1]
    tx2 = tgt_ref[2]
    ty2 = tgt_ref[3]
    w = w_ref[...]                           # (1, TN)
    rho = rho_ref[...]                       # (T, 2): [rho_min, rho_max - rho_min]

    # aligned IoU (mmdet bbox_overlaps, mode='iou', is_aligned=True)
    iw = jnp.maximum(jnp.minimum(px2, tx2) - jnp.maximum(px1, tx1), 0.0)
    ih = jnp.maximum(jnp.minimum(py2, ty2) - jnp.maximum(py1, ty1), 0.0)
    overlap = iw * ih
    area_p = (px2 - px1) * (py2 - py1)
    area_t = (tx2 - tx1) * (ty2 - ty1)
    union = jnp.maximum(area_p + area_t - overlap, eps)
    iou = jnp.maximum(overlap / union, eps)
    loss = -jnp.log(iou)                     # (G, TN)

    # node-selective decay, tie-safe algebraic identity:
    #   l0*d0 + l1*d1 == rmin*(l0+l1) + (rmax-rmin)*min(l0, l1)
    l0 = loss[0:num_trees, :]                # node 0, all trees (T, TN)
    l1 = loss[num_trees:, :]                 # node 1, all trees (T, TN)
    rmin = rho[:, 0:1]                       # (T, 1)
    rdiff = rho[:, 1:2]                      # rho_max - rho_min (T, 1)
    contrib = (rmin * (l0 + l1) + rdiff * jnp.minimum(l0, l1)) * w   # (T, TN)

    # Mask the ragged tail in-kernel (no wrapper padding).  The clipped DMA
    # leaves garbage (possibly NaN) in lanes >= n_boxes, so use a select, never
    # a multiply-by-zero.
    col = pl.program_id(0) * tn + jax.lax.broadcasted_iota(jnp.int32, (1, tn), 1)
    contrib = jnp.where(col < n_boxes, contrib, 0.0)

    # Per-step scalar (cross-lane reduce is free under the DMA bound); write it
    # into lane 0 of this step's private (1, 128) output block.
    s = jnp.sum(contrib, axis=1, keepdims=True)      # (T, 1)
    s = jnp.sum(s, axis=0, keepdims=True)            # (1, 1)
    lane_idx = jax.lax.broadcasted_iota(jnp.int32, (1, 128), 1)
    out_ref[...] = jnp.where(lane_idx == 0, s, 0.0)


def ns_iou_loss_pallas(pred, aa, target, weight, rho_min, rho_max, *,
                       reduction='mean', avg_factor=None, loss_weight=1.0,
                       block_lanes=32768):
    """Pallas implementation of NSIoULoss.forward (reduction 'mean'/'sum').

    The per-tree decay factors (drawn with np.random.uniform per call in the
    original torch code) are taken as explicit inputs rho_min/rho_max (T,).
    block_lanes: max boxes per grid step; 32768 is sized for v6e/v7x, use
    16384 on v5e if HBM-bound step time already exceeds ~1.7 us.
    """
    del aa  # routing probabilities are reshaped but never used by the torch loss

    pred = pred.astype(jnp.float32)
    target = target.astype(jnp.float32)
    n, c = pred.shape
    groups = c // target.shape[1]
    num_nodes = 2
    num_trees = groups // num_nodes

    if n == 0:                                # guard 0/0 in the 'mean' path
        return jnp.zeros((), jnp.float32)

    if weight is None:
        weight = jnp.ones((n,), jnp.float32)
    if weight.ndim > 1:
        weight = weight[:, 0]
    weight = weight.astype(jnp.float32)

    # --- lane-dense repack: boxes (N) on the lane axis (single copy pass) ---
    # TODO(synk): the producing layer could emit pred directly as (4, G, N) to
    # avoid this transpose pass over pred entirely.
    pred_rows = jnp.transpose(
        pred.reshape(n, num_trees, num_nodes, 4), (3, 2, 1, 0)
    ).reshape(4, groups, n)                   # (4, G, N), G-axis = node*T + tree
    tgt_rows = target.T.reshape(4, 1, n)      # (4, 1, N)
    w_rows = weight.reshape(1, n)             # (1, N)

    rmin = jnp.asarray(rho_min, jnp.float32).reshape(num_trees, 1)
    rmax = jnp.asarray(rho_max, jnp.float32).reshape(num_trees, 1)
    rho = jnp.concatenate([rmin, rmax - rmin], axis=1)     # (T, 2)

    # --- tile selection: no padding copies, ragged tail masked in-kernel -----
    lane = 128
    n_lanes = -(-n // lane) * lane
    if n_lanes <= 4096:
        tn = n_lanes                           # one small step
    else:
        # >= 2 grid steps so both v7x TensorCores get work; cap at block_lanes.
        half = (((n_lanes + 1) // 2) + lane - 1) // lane * lane
        tn = min((int(block_lanes) // lane) * lane, half)
        tn = max(tn, lane)
    # keep the double-buffered per-step working set well inside scoped VMEM
    # (~2 * (4G + 5) * tn * 4 B); only bites for very large G.
    bytes_per_lane = 2 * (4 * groups + 5) * 4
    max_tn = max(lane, ((24 << 20) // bytes_per_lane) // lane * lane)
    tn = min(tn, max_tn)

    num_steps = -(-n // tn)
    grid = (num_steps,)

    kernel = functools.partial(_ns_iou_kernel, n_boxes=n)
    partial_sums = pl.pallas_call(
        kernel,
        out_shape=jax.ShapeDtypeStruct((1, lane * num_steps), jnp.float32),
        grid_spec=pltpu.PrefetchScalarGridSpec(
            num_scalar_prefetch=0,
            grid=grid,
            in_specs=[
                pl.BlockSpec((4, groups, tn), lambda i: (0, 0, i)),
                pl.BlockSpec((4, 1, tn), lambda i: (0, 0, i)),
                pl.BlockSpec((1, tn), lambda i: (0, i)),
                # constant block index: fetched once, not re-DMA'd per step
                pl.BlockSpec((num_trees, 2), lambda i: (0, 0)),
            ],
            out_specs=pl.BlockSpec((1, lane), lambda i: (0, i)),
        ),
        compiler_params=pltpu.CompilerParams(
            dimension_semantics=("parallel",)),
    )(pred_rows, tgt_rows, w_rows, rho)

    total = jnp.sum(partial_sums)              # tiny (1, 128*steps) array

    eps32 = jnp.finfo(jnp.float32).eps
    if reduction == 'mean':
        # mmdet weight_reduce_loss: sum()/avg_factor when avg_factor is given,
        # else mean over all N*G elements; the trailing *2/groups is applied
        # after, exactly as in the torch code.  Clamp denom to avoid 0/0.
        denom = avg_factor if avg_factor is not None else n * groups
        loss = total / jnp.maximum(jnp.asarray(denom, jnp.float32), eps32)
    elif reduction == 'sum':
        loss = total
    else:
        # TODO(synk): reduction='none' needs a per-element (N, G) output block.
        raise NotImplementedError("reduction='none' not implemented")
    return loss_weight * 2.0 * loss / groups


def ns_iou_loss_ref(pred, target, weight, rho_min, rho_max, loss_weight=1.0):
    """Pure-JAX reference matching the PyTorch ns_iou_loss (mean reduction)."""
    n, c = pred.shape
    g = c // 4
    t = g // 2
    eps = 1e-6
    boxes = pred.reshape(n, g, 4).astype(jnp.float32)
    tx1, ty1, tx2, ty2 = (target[:, k:k + 1].astype(jnp.float32) for k in range(4))
    px1, py1, px2, py2 = boxes[..., 0], boxes[..., 1], boxes[..., 2], boxes[..., 3]
    iw = jnp.maximum(jnp.minimum(px2, tx2) - jnp.maximum(px1, tx1), 0.0)
    ih = jnp.maximum(jnp.minimum(py2, ty2) - jnp.maximum(py1, ty1), 0.0)
    overlap = iw * ih
    union = jnp.maximum((px2 - px1) * (py2 - py1)
                        + (tx2 - tx1) * (ty2 - ty1) - overlap, eps)
    loss = -jnp.log(jnp.maximum(overlap / union, eps)).reshape(n, t, 2)
    sel0 = loss[..., 0] <= loss[..., 1]
    rmin = jnp.asarray(rho_min, jnp.float32).reshape(1, t)
    rmax = jnp.asarray(rho_max, jnp.float32).reshape(1, t)
    decay = jnp.stack([jnp.where(sel0, rmax, rmin),
                       jnp.where(sel0, rmin, rmax)], axis=-1)
    if weight.ndim > 1:
        weight = weight[:, 0]
    wl = (loss * decay).reshape(n, g) * weight[:, None]
    return loss_weight * 2.0 * wl.mean() / g


def _make_boxes(k, shape_prefix):
    kxy, kwh = jax.random.split(k)
    xy = jax.random.uniform(kxy, shape_prefix + (2,), jnp.float32, 0.0, 10.0)
    wh = jax.random.uniform(kwh, shape_prefix + (2,), jnp.float32, 1.0, 6.0)
    return jnp.concatenate([xy, xy + wh], axis=-1)


if __name__ == "__main__":
    key = jax.random.PRNGKey(0)
    groups = 4                       # pred (N, 4*G), target (N, 4)
    num_trees = groups // 2
    k_rmin, k_rmax, k_small, k_big = jax.random.split(key, 4)

    # Deterministic stand-in for the per-tree np.random.uniform decay factors.
    rho_min = jax.random.uniform(k_rmin, (num_trees,), jnp.float32, 0.1, 0.3)
    rho_max = jax.random.uniform(k_rmax, (num_trees,), jnp.float32, 0.9, 1.1)

    ok = True
    # (n=16: single step; n=5000: 2 parallel grid steps + ragged masked tail)
    for n, k_case in ((16, k_small), (5000, k_big)):
        k_pred, k_tgt, k_aa, k_w = jax.random.split(k_case, 4)
        pred = _make_boxes(k_pred, (n, groups)).reshape(n, 4 * groups)
        target = _make_boxes(k_tgt, (n,))
        aa = jax.random.uniform(k_aa, (n, groups), jnp.float32)
        weight = jax.random.uniform(k_w, (n, 4), jnp.float32, 0.5, 1.5)

        out = ns_iou_loss_pallas(pred, aa, target, weight, rho_min, rho_max,
                                 reduction='mean', loss_weight=1.0)
        out = jax.block_until_ready(out)
        ref = ns_iou_loss_ref(pred, target, weight, rho_min, rho_max, 1.0)
        ok = ok and bool(jnp.allclose(out, ref, rtol=1e-4, atol=1e-5))
        assert ok, (n, out, ref)

    print("KERNEL_OK")
</pallas_src>

<mosaic_0001>
module attributes {stable_mosaic.version = 11 : i64} {
  func.func @_ns_iou_kernel(%arg0: i32, %arg1: memref<4x4x128xf32, #tpu.memory_space<vmem>>, %arg2: memref<4x1x128xf32, #tpu.memory_space<vmem>>, %arg3: memref<1x128xf32, #tpu.memory_space<vmem>>, %arg4: memref<2x2xf32, #tpu.memory_space<vmem>>, %arg5: memref<1x128xf32, #tpu.memory_space<vmem>>) attributes {dimension_semantics = [#tpu.dimension_semantics<parallel>], iteration_bounds = array<i64: 1>, scalar_prefetch = 0 : i64, scratch_operands = 0 : i64, tpu.core_type = #tpu.core_type<tc>, window_params = [{transform_indices = @transform_0, window_bounds = array<i64: 4, 4, 128>}, {transform_indices = @transform_1, window_bounds = array<i64: 4, 1, 128>}, {transform_indices = @transform_2, window_bounds = array<i64: 1, 128>}, {pipeline_mode = #tpu.pipeline_mode<synchronous>, transform_indices = @transform_3, window_bounds = array<i64: 2, 2>}, {transform_indices = @transform_4, window_bounds = array<i64: 1, 128>}]} {
    %c0 = arith.constant 0 : index
    %c0_0 = arith.constant 0 : index
    %c0_1 = arith.constant 0 : index
    %0 = vector.load %arg1[%c0, %c0_0, %c0_1] : memref<4x4x128xf32, #tpu.memory_space<vmem>>, vector<1x4x128xf32>
    %1 = vector.shape_cast %0 : vector<1x4x128xf32> to vector<4x128xf32>
    %c1 = arith.constant 1 : index
    %c0_2 = arith.constant 0 : index
    %c0_3 = arith.constant 0 : index
    %2 = vector.load %arg1[%c1, %c0_2, %c0_3] : memref<4x4x128xf32, #tpu.memory_space<vmem>>, vector<1x4x128xf32>
    %3 = vector.shape_cast %2 : vector<1x4x128xf32> to vector<4x128xf32>
    %c2 = arith.constant 2 : index
    %c0_4 = arith.constant 0 : index
    %c0_5 = arith.constant 0 : index
    %4 = vector.load %arg1[%c2, %c0_4, %c0_5] : memref<4x4x128xf32, #tpu.memory_space<vmem>>, vector<1x4x128xf32>
    %5 = vector.shape_cast %4 : vector<1x4x128xf32> to vector<4x128xf32>
    %c3 = arith.constant 3 : index
    %c0_6 = arith.constant 0 : index
    %c0_7 = arith.constant 0 : index
    %6 = vector.load %arg1[%c3, %c0_6, %c0_7] : memref<4x4x128xf32, #tpu.memory_space<vmem>>, vector<1x4x128xf32>
    %7 = vector.shape_cast %6 : vector<1x4x128xf32> to vector<4x128xf32>
    %c0_8 = arith.constant 0 : index
    %c0_9 = arith.constant 0 : index
    %c0_10 = arith.constant 0 : index
    %8 = vector.load %arg2[%c0_8, %c0_9, %c0_10] : memref<4x1x128xf32, #tpu.memory_space<vmem>>, vector<1x1x128xf32>
    %9 = vector.shape_cast %8 : vector<1x1x128xf32> to vector<1x128xf32>
    %c1_11 = arith.constant 1 : index
    %c0_12 = arith.constant 0 : index
    %c0_13 = arith.constant 0 : index
    %10 = vector.load %arg2[%c1_11, %c0_12, %c0_13] : memref<4x1x128xf32, #tpu.memory_space<vmem>>, vector<1x1x128xf32>
    %11 = vector.shape_cast %10 : vector<1x1x128xf32> to vector<1x128xf32>
    %c2_14 = arith.constant 2 : index
    %c0_15 = arith.constant 0 : index
    %c0_16 = arith.constant 0 : index
    %12 = vector.load %arg2[%c2_14, %c0_15, %c0_16] : memref<4x1x128xf32, #tpu.memory_space<vmem>>, vector<1x1x128xf32>
    %13 = vector.shape_cast %12 : vector<1x1x128xf32> to vector<1x128xf32>
    %c3_17 = arith.constant 3 : index
    %c0_18 = arith.constant 0 : index
    %c0_19 = arith.constant 0 : index
    %14 = vector.load %arg2[%c3_17, %c0_18, %c0_19] : memref<4x1x128xf32, #tpu.memory_space<vmem>>, vector<1x1x128xf32>
    %15 = vector.shape_cast %14 : vector<1x1x128xf32> to vector<1x128xf32>
    %c0_20 = arith.constant 0 : index
    %c0_21 = arith.constant 0 : index
    %16 = vector.load %arg3[%c0_20, %c0_21] : memref<1x128xf32, #tpu.memory_space<vmem>>, vector<1x128xf32>
    %c0_22 = arith.constant 0 : index
    %c0_23 = arith.constant 0 : index
    %17 = vector.load %arg4[%c0_22, %c0_23] : memref<2x2xf32, #tpu.memory_space<vmem>>, vector<2x2xf32>
    %18 = vector.broadcast %13 : vector<1x128xf32> to vector<4x128xf32>
    %19 = arith.minimumf %5, %18 : vector<4x128xf32>
    %20 = vector.broadcast %9 : vector<1x128xf32> to vector<4x128xf32>
    %21 = arith.maximumf %1, %20 : vector<4x128xf32>
    %22 = arith.subf %19, %21 : vector<4x128xf32>
    %cst = arith.constant 0.000000e+00 : f32
    %23 = vector.broadcast %cst : f32 to vector<4x128xf32>
    %24 = arith.maximumf %22, %23 : vector<4x128xf32>
    %25 = vector.broadcast %15 : vector<1x128xf32> to vector<4x128xf32>
    %26 = arith.minimumf %7, %25 : vector<4x128xf32>
    %27 = vector.broadcast %11 : vector<1x128xf32> to vector<4x128xf32>
    %28 = arith.maximumf %3, %27 : vector<4x128xf32>
    %29 = arith.subf %26, %28 : vector<4x128xf32>
    %cst_24 = arith.constant 0.000000e+00 : f32
    %30 = vector.broadcast %cst_24 : f32 to vector<4x128xf32>
    %31 = arith.maximumf %29, %30 : vector<4x128xf32>
    %32 = arith.mulf %24, %31 : vector<4x128xf32>
    %33 = arith.subf %5, %1 : vector<4x128xf32>
    %34 = arith.subf %7, %3 : vector<4x128xf32>
    %35 = arith.mulf %33, %34 : vector<4x128xf32>
    %36 = arith.subf %13, %9 : vector<1x128xf32>
    %37 = arith.subf %15, %11 : vector<1x128xf32>
    %38 = arith.mulf %36, %37 : vector<1x128xf32>
    %39 = vector.broadcast %38 : vector<1x128xf32> to vector<4x128xf32>
    %40 = arith.addf %35, %39 : vector<4x128xf32>
    %41 = arith.subf %40, %32 : vector<4x128xf32>
    %cst_25 = arith.constant 9.99999997E-7 : f32
    %42 = vector.broadcast %cst_25 : f32 to vector<4x128xf32>
    %43 = arith.maximumf %41, %42 : vector<4x128xf32>
    %44 = arith.divf %32, %43 : vector<4x128xf32>
    %cst_26 = arith.constant 9.99999997E-7 : f32
    %45 = vector.broadcast %cst_26 : f32 to vector<4x128xf32>
    %46 = arith.maximumf %44, %45 : vector<4x128xf32>
    %47 = math.log %46 : vector<4x128xf32>
    %cst_27 = arith.constant 0.000000e+00 : f32
    %48 = vector.broadcast %cst_27 : f32 to vector<4x128xf32>
    %49 = arith.subf %48, %47 : vector<4x128xf32>
    %50 = vector.extract_strided_slice %49 {offsets = [0, 0], sizes = [2, 128], strides = [1, 1]} : vector<4x128xf32> to vector<2x128xf32>
    %51 = vector.extract_strided_slice %49 {offsets = [2, 0], sizes = [2, 128], strides = [1, 1]} : vector<4x128xf32> to vector<2x128xf32>
    %52 = vector.extract_strided_slice %17 {offsets = [0, 0], sizes = [2, 1], strides = [1, 1]} : vector<2x2xf32> to vector<2x1xf32>
    %53 = vector.extract_strided_slice %17 {offsets = [0, 1], sizes = [2, 1], strides = [1, 1]} : vector<2x2xf32> to vector<2x1xf32>
    %54 = arith.addf %50, %51 : vector<2x128xf32>
    %55 = vector.broadcast %52 : vector<2x1xf32> to vector<2x128xf32>
    %56 = arith.mulf %55, %54 : vector<2x128xf32>
    %57 = arith.minimumf %50, %51 : vector<2x128xf32>
    %58 = vector.broadcast %53 : vector<2x1xf32> to vector<2x128xf32>
    %59 = arith.mulf %58, %57 : vector<2x128xf32>
    %60 = arith.addf %56, %59 : vector<2x128xf32>
    %61 = vector.broadcast %16 : vector<1x128xf32> to vector<2x128xf32>
    %62 = arith.mulf %60, %61 : vector<2x128xf32>
    %c128_i32 = arith.constant 128 : i32
    %63 = arith.muli %arg0, %c128_i32 : i32
    %64 = tpu.iota {dimensions = array<i32: 1>} : vector<1x128xi32>
    %65 = vector.broadcast %63 : i32 to vector<1x128xi32>
    %66 = arith.addi %65, %64 : vector<1x128xi32>
    %c16_i32 = arith.constant 16 : i32
    %67 = vector.broadcast %c16_i32 : i32 to vector<1x128xi32>
    %68 = arith.cmpi slt, %66, %67 : vector<1x128xi32>
    %cst_28 = arith.constant 0.000000e+00 : f32
    %69 = vector.shape_cast %68 : vector<1x128xi1> to vector<1x128xi1>
    %70 = vector.broadcast %69 : vector<1x128xi1> to vector<2x128xi1>
    %71 = vector.broadcast %cst_28 : f32 to vector<2x128xf32>
    %72 = arith.select %70, %62, %71 : vector<2x128xi1>, vector<2x128xf32>
    %cst_29 = arith.constant dense<0.000000e+00> : vector<2xf32>
    %73 = vector.multi_reduction <add>, %72, %cst_29 [1] : vector<2x128xf32> to vector<2xf32>
    %74 = vector.shape_cast %73 : vector<2xf32> to vector<2x1xf32>
    %cst_30 = arith.constant dense<0.000000e+00> : vector<1xf32>
    %75 = vector.multi_reduction <add>, %74, %cst_30 [0] : vector<2x1xf32> to vector<1xf32>
    %76 = vector.shape_cast %75 : vector<1xf32> to vector<1x1xf32>
    %77 = tpu.iota {dimensions = array<i32: 1>} : vector<1x128xi32>
    %c0_i32 = arith.constant 0 : i32
    %78 = vector.broadcast %c0_i32 : i32 to vector<1x128xi32>
    %79 = arith.cmpi eq, %77, %78 : vector<1x128xi32>
    %cst_31 = arith.constant 0.000000e+00 : f32
    %80 = vector.shape_cast %76 : vector<1x1xf32> to vector<1x1xf32>
    %81 = vector.broadcast %80 : vector<1x1xf32> to vector<1x128xf32>
    %82 = vector.broadcast %cst_31 : f32 to vector<1x128xf32>
    %83 = arith.select %79, %81, %82 : vector<1x128xi1>, vector<1x128xf32>
    %c0_32 = arith.constant 0 : index
    %c0_33 = arith.constant 0 : index
    %84 = vector.load %arg5[%c0_32, %c0_33] : memref<1x128xf32, #tpu.memory_space<vmem>>, vector<1x128xf32>
    tpu.vector_store %arg5[%c0_32, %c0_33], %83 {strides = array<i32>} : memref<1x128xf32, #tpu.memory_space<vmem>>, vector<1x128xf32>,
    return
  }
  func.func @transform_0(%arg0: i32) -> (i32, i32, i32) {
    %c0_i32 = arith.constant 0 : i32
    %c0_i32_0 = arith.constant 0 : i32
    %c0_i32_1 = arith.constant 0 : i32
    return %c0_i32, %c0_i32_0, %arg0 : i32, i32, i32
  }
  func.func @transform_1(%arg0: i32) -> (i32, i32, i32) {
    %c0_i32 = arith.constant 0 : i32
    %c0_i32_0 = arith.constant 0 : i32
    %c0_i32_1 = arith.constant 0 : i32
    return %c0_i32, %c0_i32_0, %arg0 : i32, i32, i32
  }
  func.func @transform_2(%arg0: i32) -> (i32, i32) {
    %c0_i32 = arith.constant 0 : i32
    %c0_i32_0 = arith.constant 0 : i32
    return %c0_i32, %arg0 : i32, i32
  }
  func.func @transform_3(%arg0: i32) -> (i32, i32) {
    %c0_i32 = arith.constant 0 : i32
    %c0_i32_0 = arith.constant 0 : i32
    %c0_i32_1 = arith.constant 0 : i32
    return %c0_i32, %c0_i32_0 : i32, i32
  }
  func.func @transform_4(%arg0: i32) -> (i32, i32) {
    %c0_i32 = arith.constant 0 : i32
    %c0_i32_0 = arith.constant 0 : i32
    return %c0_i32, %arg0 : i32, i32
  }
}

</mosaic_0001>

<bundles_post_ra>
// kernel: tpu_custom_call.1
= control target key start
LH: loop header
LB: loop body
LE: loop exit
PB: predicated region body
PF: predicated region fallthrough
CT: control target
= control target key end

     0   :  { %9 = vsyncpa [#allocation3], 0  ;;  %s343_s0 = inlined_call_operand.hbm [shape: f32[4,4,16], index: 0, kind: input, shape index: {}]   ;;  %s344_s1 = inlined_call_operand.hbm [shape: f32[4,1,16], index: 1, kind: input, shape index: {}]   ;;  %s345_s2 = inlined_call_operand.vmem [shape: f32[1,16], index: 2, kind: input, shape index: {}]   ;;  %s346_s3 = inlined_call_operand.vmem [shape: f32[2,2], index: 3, kind: input, shape index: {}]   ;;  %s347_s4 = inlined_call_operand.hbm [shape: f32[1,128], index: 4, kind: output, shape index: {}]  }
   0x1   :  { %10 = vsyncpa [#allocation6], 0 }
   0x2   :  { %11 = vsyncpa [#allocation4], 0  ;;  %s267_s15 = smov [#allocation2]   ;;  %s195_s19 = scalar_lea.hbm %s343_s0, 256 }
   0x3   :  { %s17_s16 = sshll.u32 %s267_s15, 4  ;;  %p196_p0 = scmp.ne.s32.totalorder %s343_s0, %s195_s19  ;;  %s18_s16 = int_to_ptr.vmem [resolvable:$true] %s17_s16 }
   0x4   :  { %p199_p1 = scmp.lt.u32.totalorder %s195_s19, %s343_s0 }
   0x6   :  { %p201_p2 = pnand %p199_p1, %p196_p0 }
   0x8   :  { %204 = shalt.err (!%p201_p2)
}
   0x9   :  { %s205_s24 = scalar_lea.vmem %s18_s16, 256  ;;  %p210_p4 = scmp.lt.s32.totalorder %s18_s16, %s18_s16 }
   0xa   :  { %p206_p3 = scmp.ne.s32.totalorder %s18_s16, %s205_s24  ;;  %p211_p5 = scmp.lt.s32.totalorder %s205_s24, %s205_s24 }
   0xc   :  { %p212_p6 = por %p211_p5, %p210_p4 }
   0xe   :  { %p213_p7 = pnand %p212_p6, %p206_p3 }
  0x10   :  { %216 = shalt.err (!%p213_p7)
}
  0x11   :  { %s268_s25 = smov 64   ;;  %s269_s26 = smov 4  }
  0x12   :  { %23 = dma.hbm_to_vmem [thread:$0]  %s343_s0, 256, %s18_s16, [#allocation3], %s268_s25, %s268_s25, %s269_s26  }
  0x13   :  { %s270_s29 = smov [#allocation5]   ;;  %s217_s7 = scalar_lea.hbm %s344_s1, 64 }
  0x14   :  { %s29_s30 = sshll.u32 %s270_s29, 4  ;;  %p218_p8 = scmp.ne.s32.totalorder %s344_s1, %s217_s7  ;;  %s30_s30 = int_to_ptr.vmem [resolvable:$true] %s29_s30 }
  0x15   :  { %p221_p9 = scmp.lt.u32.totalorder %s217_s7, %s344_s1 }
  0x17   :  { %p223_p10 = pnand %p221_p9, %p218_p8 }
  0x19   :  { %226 = shalt.err (!%p223_p10)
}
  0x1a   :  { %s227_s12 = scalar_lea.vmem %s30_s30, 64  ;;  %p232_p12 = scmp.lt.s32.totalorder %s30_s30, %s30_s30 }
  0x1b   :  { %p228_p11 = scmp.ne.s32.totalorder %s30_s30, %s227_s12  ;;  %p233_p13 = scmp.lt.s32.totalorder %s227_s12, %s227_s12 }
  0x1d   :  { %p234_p0 = por %p233_p13, %p232_p12 }
  0x1f   :  { %p235_p1 = pnand %p234_p0, %p228_p11 }
  0x21   :  { %238 = shalt.err (!%p235_p1)
}
  0x22   :  { %s271_s0 = smov 16   ;;  %s272_s13 = smov 1  }
  0x23   :  { %35 = dma.hbm_to_vmem [thread:$0]  %s344_s1, 64, %s30_s30, [#allocation6], %s271_s0, %s271_s0, %s272_s13  }
  0x24   :  { %261 = dma.done.wait [#allocation3], 256  }
  0x25   :  { %262 = vsyncadd [#allocation3], 4294967040 }
  0x26   :  { %263 = dma.done.wait [#allocation6], 64  }
  0x27   :  { %264 = vsyncadd [#allocation6], 4294967232  ;;  %v273_v0 = vmov 0   ;;  %v61_v1 = vld [vmem:[%s346_s3] sm:$0x3]  ;;  %v274_v2 = vmov 1   ;;  %v63_v3 = vlaneseq }
  0x28   :  { %189 = vset.pattern.permute.xlu0 %v273_v0  ;;  %v53_v6 = vld [vmem:[#allocation5] sm:$0x1]  ;;  %v55_v7 = vld [vmem:[#allocation5 + $0x1] sm:$0x1]  ;;  %v57_v8 = vld [vmem:[#allocation5 + $0x2] sm:$0x1] }
  0x29   :  { %122 = vperm.xlu0 %189, %v61_v1   ;;  %v64_v4 = vshrl.u32 %v63_v3, 7  ;;  %v59_v9 = vld [vmem:[#allocation5 + $0x3] sm:$0x1]  ;;  %v46_v11 = vld [vmem:[#allocation2] sm:$0xf]  ;;  %v98_v19 = vsub.f32 %v57_v8, %v53_v6  ;;  %v142_v48 = vand.u32 127, %v63_v3 }
  0x2a   :  { %v48_v15 = vld [vmem:[#allocation2 + $0x4] sm:$0xf]  ;;  %v50_v16 = vld [vmem:[#allocation2 + $0x8] sm:$0xf]  ;;  %v52_v17 = vld [vmem:[#allocation2 + $0xc] sm:$0xf]  ;;  %v99_v23 = vsub.f32 %v59_v9, %v55_v7 }
  0x2b   :  { %v65_v5 = vsub.s32 0, %v64_v4  ;;  %v95_v24 = vsub.f32 %v50_v16, %v46_v11  ;;  %v96_v27 = vsub.f32 %v52_v17, %v48_v15  ;;  %v179_v51 = vld [vmem:[%s345_s2] ss:$0 sm:$0xff]  ;;  %vm145_vm0 = vcmp.lt.s32.totalorder %v142_v48, 16  ;;  %s275_s18 = smov [#allocation7]  }
  0x2c   :  { %v100_v28 = vmul.f32 %v99_v23, %v98_v19  ;;  %vm149_vm1 = vcmask 1041408   ;;  %s169_s19 = sshll.u32 %s275_s18, 4  ;;  %vm160_vm2 = vcmp.eq.s32.totalorder %v142_v48, 0  ;;  %s170_s19 = int_to_ptr.vmem [resolvable:$true] %s169_s19 }
  0x2d   :  { %190 = vset.pattern.permute.xlu0 %v274_v2  ;;  %v73_v10 = vrot.slane %v53_v6, %v65_v5  ;;  %v66_v12 = vrot.slane %v57_v8, %v65_v5  ;;  %v82_v13 = vrot.slane %v59_v9, %v65_v5  ;;  %v89_v14 = vrot.slane %v55_v7, %v65_v5  ;;  %s239_s2 = scalar_lea.vmem %s170_s19, 16  ;;  %s243_s20 = scalar_lea.vmem %s170_s19, 32 }
  0x2e   :  { %128 = vperm.xlu0 %190, %v61_v1   ;;  %v97_v31 = vmul.f32 %v96_v27, %v95_v24  ;;  %v105_v32 = vrot.slane %v100_v28, %v65_v5  ;;  %p240_p2 = scmp.ne.s32.totalorder %s170_s19, %s239_s2  ;;  %p244_p3 = scmp.lt.s32.totalorder %s170_s19, %s170_s19 }
  0x2f   :  { %v75_v18 = vmax.f32 %v46_v11, %v73_v10  ;;  %v68_v20 = vmin.f32 %v50_v16, %v66_v12  ;;  %v84_v21 = vmin.f32 %v52_v17, %v82_v13  ;;  %v91_v22 = vmax.f32 %v48_v15, %v89_v14  ;;  %p245_p4 = scmp.lt.s32.totalorder %s243_s20, %s239_s2 }
  0x30   :  { %v107_v34 = vadd.f32 %v105_v32, %v97_v31 }
  0x31   :  { %v76_v25 = vsub.f32 %v68_v20, %v75_v18  ;;  %v92_v26 = vsub.f32 %v84_v21, %v91_v22  ;;  %p246_p5 = por %p245_p4, %p244_p3 }
  0x33   :  { %v77_v29 = vmax.f32 %v76_v25, 0.0  ;;  %v93_v30 = vmax.f32 %v92_v26, 0.0  ;;  %p247_p6 = pnand %p246_p5, %p240_p2 }
  0x35   :  { %v94_v33 = vmul.f32 %v93_v30, %v77_v29 }
  0x37   :  { %v108_v35 = vsub.f32 %v107_v34, %v94_v33 }
  0x39   :  { %v109_v36 = vmax.f32 %v108_v35, 1e-06 }
  0x3b   :  { %191 = vrcp.f32 %v109_v36 }
  0x45   :  { %v192_v37 = vpop.eup %191 }
  0x46   :  { %v111_v38 = vmul.f32 %v192_v37, %v94_v33 }
  0x48   :  { %v112_v39 = vmax.f32 %v111_v38, 1e-06 }
  0x4a   :  { %193 = vlog2.f32 %v112_v39 }
  0x54   :  { %v194_v40 = vpop.eup %193 }
  0x55   :  { %v114_v41 = vmul.f32 0.6931472, %v194_v40 }
  0x57   :  { %v115_v42 = vsub.f32 0.0, %v114_v41 }
  0x59   :  { %v117_v43 = vrot.slane %v115_v42, 2 }
  0x5b   :  { %v119_v45 = vadd.f32 %v117_v43, %v115_v42  ;;  %v126_v46 = vmin.f32 %v115_v42, %v117_v43 }
  0xa8   :  { %v123_v44 = vpop.permute.xlu0 %122 }
  0xa9   :  { %v125_v49 = vmul.f32 %v123_v44, %v119_v45 }
  0xad   :  { %v129_v47 = vpop.permute.xlu0 %128 }
  0xae   :  { %v131_v50 = vmul.f32 %v129_v47, %v126_v46 }
  0xb0   :  { %v132_v52 = vadd.f32 %v131_v50, %v125_v49 }
  0xb2   :  { %v139_v53 = vmul.f32 %v179_v51, %v132_v52 }
  0xb4   :  { %v148_v54 = vsel %vm145_vm0, %v139_v53, 0.0 }
  0xb5   :  { %v150_v55 = vsel %vm149_vm1, %v148_v54, 0.0 }
  0xb6   :  { %151 = vadd.xlane.f32.xlu1 %v150_v55 }
 0x143   :  { %v152_v56 = vpop.xlane.xlu1 %151 }
 0x144   :  { %v153_v57 = vsel %vm149_vm1, %v152_v56, 0.0 }
 0x145   :  { %v154_v58 = vrot.slane %v153_v57, 4 }
 0x147   :  { %v155_v59 = vadd.f32 %v154_v58, %v153_v57 }
 0x149   :  { %v156_v60 = vrot.slane %v155_v59, 2 }
 0x14b   :  { %v157_v61 = vadd.f32 %v156_v60, %v155_v59 }
 0x14d   :  { %v158_v62 = vrot.slane %v157_v61, 1 }
 0x14f   :  { %v159_v63 = vadd.f32 %v158_v62, %v157_v61 }
 0x151   :  { %v161_v0 = vsel %vm160_vm2, %v159_v63, 0.0 }
 0x152   :  { %162 = vst [vmem:[#allocation7] sm:$0x1] %v161_v0 }
 0x153   :  { %250 = shalt.err (!%p247_p6)
}
 0x154   :  { %s251_s23 = scalar_lea.hbm %s347_s4, 16 }
 0x155   :  { %p252_p7 = scmp.ne.s32.totalorder %s347_s4, %s251_s23  ;;  %p255_p8 = scmp.lt.u32.totalorder %s251_s23, %s347_s4 }
 0x157   :  { %p257_p9 = pnand %p255_p8, %p252_p7 }
 0x159   :  { %260 = shalt.err (!%p257_p9)
}
 0x15a   :  { %172 = dma.vmem_to_hbm [thread:$0]  %s170_s19, 16, %s347_s4, [#allocation4]  }
 0x15b   :  { %265 = dma.done.wait [#allocation4], 16  }
 0x15c   :  { %266 = vsyncadd [#allocation4], 4294967280 }
 0x15d   :  { %176 = vsyncpa [#allocation3], 1 }
 0x15e   :  { %177 = vsyncpa [#allocation6], 1 }
 0x15f   :  { %178 = vsyncpa [#allocation4], 1 }

</bundles_post_ra>
